<compile_context>
chip_gen: v5e
topology: v5e:2x2
jax: 0.10.0
libtpu: 0.0.40
codegen_flags: <defaults>
</compile_context>

<pallas_src>
import functools
import math

import jax
import jax.numpy as jnp
import numpy as np
from jax.experimental import pallas as pl
from jax.experimental.pallas import tpu as pltpu


def _round_up(x, m):
    return (x + m - 1) // m * m


# --------------------------------------------------------------------- projection
def _proj_kernel(x_ref, w_ref, a_src_ref, a_dst_ref, h_ref, esrc_ref, edst_ref):
    h = jnp.dot(x_ref[...], w_ref[...], preferred_element_type=jnp.float32)
    # Per-node attention scores via VPU multiply + cross-lane reduce (keeps the MXU
    # free of 1-lane-wide matmuls); scores stay f32 even when h is stored bf16.
    esrc_ref[...] = jnp.sum(h * a_src_ref[...], axis=-1, keepdims=True)
    edst_ref[...] = jnp.sum(h * a_dst_ref[...], axis=-1, keepdims=True)
    h_ref[...] = h.astype(h_ref.dtype)


# --------------------------------------------------------------------- attention
def _attn_kernel(jids_ref, cnt_ref, esrc_ref, edst_ref, adj_ref, h_ref, out_ref,
                 rowsum_ref, *, neg_slope, concat, tile_j, max_nnz, resident_h):
    i = pl.program_id(0)
    t = pl.program_id(1)

    @pl.when(t == 0)
    def _init():
        rowsum_ref[...] = jnp.zeros_like(rowsum_ref)
        out_ref[...] = jnp.zeros_like(out_ref)

    # Only steps pointing at a nonzero adjacency block do work.  The compacted jids
    # table repeats the last valid block index in the padded tail, so skipped steps
    # also issue no new DMAs (block index unchanged -> no refetch).
    @pl.when(t < cnt_ref[i])
    def _accumulate():
        s = esrc_ref[...] + edst_ref[...]                  # (TI,1)+(1,TJ) -> (TI,TJ)
        lrelu = jnp.where(s >= 0, s, neg_slope * s)        # LeakyReLU(alpha)
        # TODO(synk): exp(-leakyrelu) can overflow for very large negative scores;
        # inherited from the PyTorch formulation (no max-subtraction there).
        edge_e = jnp.where(adj_ref[...] != 0, jnp.exp(-lrelu), 0.0)
        rowsum_ref[...] += jnp.sum(edge_e, axis=1, keepdims=True)
        if resident_h:
            jb = jids_ref[i * max_nnz + t]
            start = pl.multiple_of(jb * tile_j, tile_j)
            h_tile = h_ref[pl.ds(start, tile_j), :]
        else:
            h_tile = h_ref[...]
        # Accumulate straight into the resident f32 output tile (its block index is
        # constant across t, so it stays pinned in VMEM; no separate acc scratch).
        out_ref[...] += jnp.dot(edge_e.astype(h_tile.dtype), h_tile,
                                preferred_element_type=jnp.float32)

    @pl.when(t == pl.num_programs(1) - 1)
    def _finalize():
        rs = rowsum_ref[...]
        # Exact division: the approx EUP reciprocal carries ~2^-8 relative error and
        # failed the 1e-3 tolerance check; this runs once per output tile so the cost
        # is negligible. 0-degree / padded rows are guarded to 0 (PyTorch -> NaN).
        inv = 1.0 / jnp.where(rs > 0.0, rs, 1.0)
        hp = out_ref[...] * inv
        if concat:                                         # F.elu, alpha=1
            hp = jnp.where(hp > 0, hp, jnp.exp(hp) - 1.0)
        out_ref[...] = hp


# --------------------------------------------------------------------- host prep
def prepare_adjacency(adj, tile_i, tile_j, n_pad):
    """Host-side, cacheable adjacency prep: padded int8 matrix + compacted
    per-row-tile nonzero j-block table (drives DMA-level tile skipping).
    For static graphs call this once and reuse across layers / heads / steps."""
    n = adj.shape[0]
    adj_np = (np.asarray(adj) != 0)
    adj_i8 = np.zeros((n_pad, n_pad), dtype=np.int8)
    adj_i8[:n, :n] = adj_np
    n_i, n_j = n_pad // tile_i, n_pad // tile_j
    blk_nz = adj_i8.reshape(n_i, tile_i, n_j, tile_j).any(axis=(1, 3))
    counts = blk_nz.sum(axis=1).astype(np.int32)
    max_nnz = max(1, int(counts.max()))
    jids = np.zeros((n_i, max_nnz), dtype=np.int32)
    for r in range(n_i):
        nz = np.flatnonzero(blk_nz[r])
        jids[r, :nz.size] = nz
        if nz.size:
            jids[r, nz.size:] = nz[-1]      # repeat last -> skipped tail issues no DMA
    return (jnp.asarray(adj_i8), jnp.asarray(jids.reshape(-1)),
            jnp.asarray(counts), max_nnz)


# --------------------------------------------------------------------- wrapper
def sp_graph_attention_layer(x, adj, W, a, *, alpha=0.2, concat=True,
                             tile_i=512, tile_j=512, use_bf16=True,
                             resident_h=None):
    """Forward pass of SpGraphAttentionLayer. Returns (N, out_features) float32."""
    n, f_in = x.shape
    f_out = W.shape[1]
    assert a.shape == (1, 2 * f_out)

    # ---- padded, lane-dense sizes -------------------------------------------------
    # TODO(synk): for f_out > 128 on v6e/v7x (or multi-head GAT), pad the feature axis
    # to a multiple of 256 so edge_e @ h fills both 256-wide MXUs.
    f_pad = _round_up(f_out, 128)                  # lane-dense feature dim
    n_min = _round_up(n, 128)
    tile_i = max(32, min(tile_i, n_min))           # int8 adj tile needs >= (32, 128)
    tile_j = max(128, min(tile_j, n_min))
    n_pad = _round_up(n, math.lcm(tile_i, tile_j))
    n_i = n_pad // tile_i

    h_dtype = jnp.bfloat16 if use_bf16 else jnp.float32   # bf16 = full-rate MXU, 1/2 HBM
    h_bytes = 2 if use_bf16 else 4

    x_p = jnp.pad(x.astype(jnp.float32), ((0, n_pad - n), (0, 0)))
    w_p = jnp.pad(W.astype(jnp.float32), ((0, 0), (0, f_pad - f_out)))
    a_src = jnp.pad(a[:, :f_out].astype(jnp.float32), ((0, 0), (0, f_pad - f_out)))
    a_dst = jnp.pad(a[:, f_out:].astype(jnp.float32), ((0, 0), (0, f_pad - f_out)))

    # int8 adjacency (4x less HBM than f32) + compacted block-skip tables.
    adj_i8, jids, counts, max_nnz = prepare_adjacency(adj, tile_i, tile_j, n_pad)
    total_blocks = int(np.asarray(counts).sum())

    # ---- kernel 1: h = x @ W and per-node scores (hoisted out of the N^2 loop) -----
    h, e_src, e_dst = pl.pallas_call(
        _proj_kernel,
        out_shape=(jax.ShapeDtypeStruct((n_pad, f_pad), h_dtype),
                   jax.ShapeDtypeStruct((n_pad, 1), jnp.float32),
                   jax.ShapeDtypeStruct((n_pad, 1), jnp.float32)),
        grid_spec=pltpu.PrefetchScalarGridSpec(
            num_scalar_prefetch=0,
            grid=(n_i,),
            in_specs=[pl.BlockSpec((tile_i, f_in), lambda i: (i, 0)),
                      pl.BlockSpec((f_in, f_pad), lambda i: (0, 0)),
                      pl.BlockSpec((1, f_pad), lambda i: (0, 0)),
                      pl.BlockSpec((1, f_pad), lambda i: (0, 0))],
            out_specs=[pl.BlockSpec((tile_i, f_pad), lambda i: (i, 0)),
                       pl.BlockSpec((tile_i, 1), lambda i: (i, 0)),
                       pl.BlockSpec((tile_i, 1), lambda i: (i, 0))]),
        compiler_params=pltpu.CompilerParams(dimension_semantics=("parallel",)),
    )(x_p, w_p, a_src, a_dst)

    # Column scores laid out lane-major (1, N) so the kernel broadcasts without XLU work.
    e_dst_row = e_dst.reshape(1, n_pad)

    # ---- h residency decision -------------------------------------------------------
    h_total_bytes = n_pad * f_pad * h_bytes
    if resident_h is None:
        # ~20 MiB is safe on v5e/v6e (128 MiB VMEM) and on v7x (64 MiB VMEM per TC),
        # leaving room for the adj double-buffer, output tile and compiler scratch.
        resident_h = h_total_bytes <= (20 << 20)

    if resident_h:
        # Whole h resident in VMEM: no per-row-tile re-read; adj is the only N^2 stream.
        h_spec = pl.BlockSpec((n_pad, f_pad), lambda i, t, jids, cnt: (0, 0))
        h_vmem = h_total_bytes
    else:
        # Streamed h also goes through the compacted table -> zero tiles skip its DMA too.
        h_spec = pl.BlockSpec((tile_j, f_pad),
                              lambda i, t, jids, cnt: (jids[i * max_nnz + t], 0))
        h_vmem = 2 * tile_j * f_pad * h_bytes

    adj_spec = pl.BlockSpec((tile_i, tile_j),
                            lambda i, t, jids, cnt: (i, jids[i * max_nnz + t]))
    # TODO(synk): on v5e consider pipeline_mode=pl.Buffered(3) on adj (and streamed h)
    # to hide exposed DMA latency behind near-empty skipped steps.
    edst_spec = pl.BlockSpec((1, tile_j),
                             lambda i, t, jids, cnt: (0, jids[i * max_nnz + t]))
    esrc_spec = pl.BlockSpec((tile_i, 1), lambda i, t, jids, cnt: (i, 0))
    out_spec = pl.BlockSpec((tile_i, f_pad), lambda i, t, jids, cnt: (i, 0))

    vmem_est = (2 * tile_i * tile_j                      # int8 adj (double-buffered)
                + h_vmem                                 # resident or streamed h
                + 2 * (tile_i + tile_j) * 4              # e_src / e_dst tiles
                + tile_i * f_pad * 4                     # resident f32 out tile
                + tile_i * 4                             # rowsum scratch
                + 3 * tile_i * tile_j * 4)               # s / edge_e temporaries
    vmem_limit = int(min(max(2 * vmem_est, 32 << 20), 48 << 20))  # cap < v7x 64 MiB

    cost = pl.CostEstimate(
        flops=2 * total_blocks * tile_i * tile_j * f_pad
              + 6 * total_blocks * tile_i * tile_j,
        transcendentals=total_blocks * tile_i * tile_j,
        bytes_accessed=(total_blocks * tile_i * tile_j                    # adj (int8)
                        + (h_total_bytes if resident_h
                           else total_blocks * tile_j * f_pad * h_bytes)  # h stream
                        + n_pad * f_pad * 4 + 2 * n_pad * 4))

    kernel = functools.partial(_attn_kernel, neg_slope=float(alpha),
                               concat=bool(concat), tile_j=tile_j,
                               max_nnz=max_nnz, resident_h=bool(resident_h))

    out = pl.pallas_call(
        kernel,
        out_shape=jax.ShapeDtypeStruct((n_pad, f_pad), jnp.float32),
        grid_spec=pltpu.PrefetchScalarGridSpec(
            num_scalar_prefetch=2,
            grid=(n_i, max_nnz),                         # reduction axis (t) last
            in_specs=[esrc_spec, edst_spec, adj_spec, h_spec],
            out_specs=out_spec,
            scratch_shapes=[pltpu.VMEM((tile_i, 1), jnp.float32)]),
        compiler_params=pltpu.CompilerParams(
            dimension_semantics=("parallel", "arbitrary"),
            vmem_limit_bytes=vmem_limit),
        cost_estimate=cost,
    )(jids, counts, e_src, e_dst_row, adj_i8, h)

    return out[:n, :f_out]


def _reference(x, adj, W, a, *, alpha=0.2, concat=True):
    """Pure-JAX dense fp32 reference of the PyTorch forward (for verification)."""
    f_out = W.shape[1]
    h = x @ W
    e1 = h @ a[0, :f_out]
    e2 = h @ a[0, f_out:]
    s = e1[:, None] + e2[None, :]
    lrelu = jnp.where(s >= 0, s, alpha * s)
    edge_e = jnp.where(adj != 0, jnp.exp(-lrelu), 0.0)
    rowsum = edge_e.sum(axis=1, keepdims=True)
    hp = (edge_e @ h) / rowsum
    return jnp.where(hp > 0, hp, jnp.exp(hp) - 1.0) if concat else hp


if __name__ == "__main__":
    N, F_IN, F_OUT = 16, 32, 16
    ALPHA = 0.2

    key = jax.random.PRNGKey(0)
    kx, kadj, kw, ka = jax.random.split(key, 4)

    # node features
    x = jax.random.normal(kx, (N, F_IN), dtype=jnp.float32)

    # random sparse adjacency with self-loops (guarantees nonzero row sums)
    adj = (jax.random.uniform(kadj, (N, N)) < 0.3).astype(jnp.float32)
    adj = jnp.maximum(adj, jnp.eye(N, dtype=jnp.float32))

    # deterministic xavier_normal_ init (gain=1.414), matching the module's shapes
    w_std = 1.414 * np.sqrt(2.0 / (F_IN + F_OUT))
    W = w_std * jax.random.normal(kw, (F_IN, F_OUT), dtype=jnp.float32)
    a_std = 1.414 * np.sqrt(2.0 / (1 + 2 * F_OUT))
    a = a_std * jax.random.normal(ka, (1, 2 * F_OUT), dtype=jnp.float32)

    ref = _reference(x, adj, W, a, alpha=ALPHA, concat=True)

    # 1) f32 datapath, resident-h fast path (exact division in finalize).
    out_f32 = jax.block_until_ready(
        sp_graph_attention_layer(x, adj, W, a, alpha=ALPHA, concat=True,
                                 use_bf16=False))
    np.testing.assert_allclose(np.asarray(out_f32), np.asarray(ref),
                               rtol=2e-3, atol=2e-3)

    # 2) f32 datapath with h streamed per nonzero j-block (exercises the streaming specs).
    out_stream = jax.block_until_ready(
        sp_graph_attention_layer(x, adj, W, a, alpha=ALPHA, concat=True,
                                 use_bf16=False, resident_h=False))
    np.testing.assert_allclose(np.asarray(out_stream), np.asarray(ref),
                               rtol=2e-3, atol=2e-3)

    # 3) Default bf16 datapath (full-rate MXU, half the h traffic) -- bf16 tolerance.
    out_bf16 = jax.block_until_ready(
        sp_graph_attention_layer(x, adj, W, a, alpha=ALPHA, concat=True))
    np.testing.assert_allclose(np.asarray(out_bf16), np.asarray(ref),
                               rtol=4e-2, atol=4e-2)

    print("KERNEL_OK")
</pallas_src>

<mosaic_0001>
module attributes {stable_mosaic.version = 11 : i64} {
  func.func @_proj_kernel(%arg0: i32, %arg1: memref<128x32xf32, #tpu.memory_space<vmem>>, %arg2: memref<32x128xf32, #tpu.memory_space<vmem>>, %arg3: memref<1x128xf32, #tpu.memory_space<vmem>>, %arg4: memref<1x128xf32, #tpu.memory_space<vmem>>, %arg5: memref<128x128xf32, #tpu.memory_space<vmem>>, %arg6: memref<128x1xf32, #tpu.memory_space<vmem>>, %arg7: memref<128x1xf32, #tpu.memory_space<vmem>>) attributes {dimension_semantics = [#tpu.dimension_semantics<parallel>], iteration_bounds = array<i64: 1>, scalar_prefetch = 0 : i64, scratch_operands = 0 : i64, tpu.core_type = #tpu.core_type<tc>, window_params = [{transform_indices = @transform_0, window_bounds = array<i64: 128, 32>}, {pipeline_mode = #tpu.pipeline_mode<synchronous>, transform_indices = @transform_1, window_bounds = array<i64: 32, 128>}, {pipeline_mode = #tpu.pipeline_mode<synchronous>, transform_indices = @transform_2, window_bounds = array<i64: 1, 128>}, {pipeline_mode = #tpu.pipeline_mode<synchronous>, transform_indices = @transform_3, window_bounds = array<i64: 1, 128>}, {transform_indices = @transform_4, window_bounds = array<i64: 128, 128>}, {transform_indices = @transform_5, window_bounds = array<i64: 128, 1>}, {transform_indices = @transform_6, window_bounds = array<i64: 128, 1>}]} {
    %c0 = arith.constant 0 : index
    %c0_0 = arith.constant 0 : index
    %0 = vector.load %arg1[%c0, %c0_0] : memref<128x32xf32, #tpu.memory_space<vmem>>, vector<128x32xf32>
    %c0_1 = arith.constant 0 : index
    %c0_2 = arith.constant 0 : index
    %1 = vector.load %arg2[%c0_1, %c0_2] : memref<32x128xf32, #tpu.memory_space<vmem>>, vector<32x128xf32>
    %cst = arith.constant dense<0.000000e+00> : vector<128x128xf32>
    %2 = tpu.matmul %0, %1, %cst {dimension_numbers = #tpu.dot_dimension_numbers<[1], [0], [0], [1], [0, 0, 1, 1], [], []>} : vector<128x32xf32>, vector<32x128xf32>, vector<128x128xf32> -> vector<128x128xf32>
    %c0_3 = arith.constant 0 : index
    %c0_4 = arith.constant 0 : index
    %3 = vector.load %arg3[%c0_3, %c0_4] : memref<1x128xf32, #tpu.memory_space<vmem>>, vector<1x128xf32>
    %4 = vector.broadcast %3 : vector<1x128xf32> to vector<128x128xf32>
    %5 = arith.mulf %2, %4 : vector<128x128xf32>
    %cst_5 = arith.constant dense<0.000000e+00> : vector<128xf32>
    %6 = vector.multi_reduction <add>, %5, %cst_5 [1] : vector<128x128xf32> to vector<128xf32>
    %7 = vector.shape_cast %6 : vector<128xf32> to vector<128x1xf32>
    %c0_6 = arith.constant 0 : index
    %c0_7 = arith.constant 0 : index
    %8 = vector.load %arg6[%c0_6, %c0_7] : memref<128x1xf32, #tpu.memory_space<vmem>>, vector<128x1xf32>
    tpu.vector_store %arg6[%c0_6, %c0_7], %7 {strides = array<i32>} : memref<128x1xf32, #tpu.memory_space<vmem>>, vector<128x1xf32>,
    %c0_8 = arith.constant 0 : index
    %c0_9 = arith.constant 0 : index
    %9 = vector.load %arg4[%c0_8, %c0_9] : memref<1x128xf32, #tpu.memory_space<vmem>>, vector<1x128xf32>
    %10 = vector.broadcast %9 : vector<1x128xf32> to vector<128x128xf32>
    %11 = arith.mulf %2, %10 : vector<128x128xf32>
    %cst_10 = arith.constant dense<0.000000e+00> : vector<128xf32>
    %12 = vector.multi_reduction <add>, %11, %cst_10 [1] : vector<128x128xf32> to vector<128xf32>
    %13 = vector.shape_cast %12 : vector<128xf32> to vector<128x1xf32>
    %c0_11 = arith.constant 0 : index
    %c0_12 = arith.constant 0 : index
    %14 = vector.load %arg7[%c0_11, %c0_12] : memref<128x1xf32, #tpu.memory_space<vmem>>, vector<128x1xf32>
    tpu.vector_store %arg7[%c0_11, %c0_12], %13 {strides = array<i32>} : memref<128x1xf32, #tpu.memory_space<vmem>>, vector<128x1xf32>,
    %c0_13 = arith.constant 0 : index
    %c0_14 = arith.constant 0 : index
    %15 = vector.load %arg5[%c0_13, %c0_14] : memref<128x128xf32, #tpu.memory_space<vmem>>, vector<128x128xf32>
    tpu.vector_store %arg5[%c0_13, %c0_14], %2 {strides = array<i32>} : memref<128x128xf32, #tpu.memory_space<vmem>>, vector<128x128xf32>,
    return
  }
  func.func @transform_0(%arg0: i32) -> (i32, i32) {
    %c0_i32 = arith.constant 0 : i32
    %c0_i32_0 = arith.constant 0 : i32
    return %arg0, %c0_i32 : i32, i32
  }
  func.func @transform_1(%arg0: i32) -> (i32, i32) {
    %c0_i32 = arith.constant 0 : i32
    %c0_i32_0 = arith.constant 0 : i32
    %c0_i32_1 = arith.constant 0 : i32
    return %c0_i32, %c0_i32_0 : i32, i32
  }
  func.func @transform_2(%arg0: i32) -> (i32, i32) {
    %c0_i32 = arith.constant 0 : i32
    %c0_i32_0 = arith.constant 0 : i32
    %c0_i32_1 = arith.constant 0 : i32
    return %c0_i32, %c0_i32_0 : i32, i32
  }
  func.func @transform_3(%arg0: i32) -> (i32, i32) {
    %c0_i32 = arith.constant 0 : i32
    %c0_i32_0 = arith.constant 0 : i32
    %c0_i32_1 = arith.constant 0 : i32
    return %c0_i32, %c0_i32_0 : i32, i32
  }
  func.func @transform_4(%arg0: i32) -> (i32, i32) {
    %c0_i32 = arith.constant 0 : i32
    %c0_i32_0 = arith.constant 0 : i32
    return %arg0, %c0_i32 : i32, i32
  }
  func.func @transform_5(%arg0: i32) -> (i32, i32) {
    %c0_i32 = arith.constant 0 : i32
    %c0_i32_0 = arith.constant 0 : i32
    return %arg0, %c0_i32 : i32, i32
  }
  func.func @transform_6(%arg0: i32) -> (i32, i32) {
    %c0_i32 = arith.constant 0 : i32
    %c0_i32_0 = arith.constant 0 : i32
    return %arg0, %c0_i32 : i32, i32
  }
}

</mosaic_0001>

<bundles_post_ra>
// kernel: tpu_custom_call.1
= control target key start
LH: loop header
LB: loop body
LE: loop exit
PB: predicated region body
PF: predicated region fallthrough
CT: control target
= control target key end

     0   :  { %vm41_vm0 = vcmask 261120   ;;  %s685_s0 = inlined_call_operand.vmem [shape: f32[128,32], index: 0, kind: input, shape index: {}]   ;;  %s686_s1 = inlined_call_operand.vmem [shape: f32[32,128], index: 1, kind: input, shape index: {}]   ;;  %s687_s2 = inlined_call_operand.vmem [shape: f32[1,128], index: 2, kind: input, shape index: {}]   ;;  %s688_s3 = inlined_call_operand.vmem [shape: f32[1,128], index: 3, kind: input, shape index: {}]   ;;  %s689_s4 = inlined_call_operand.hbm [shape: f32[128,128], index: 4, kind: output, shape index: {0}]   ;;  %s690_s5 = inlined_call_operand.vmem [shape: f32[128,1], index: 5, kind: output, shape index: {1}]   ;;  %s691_s6 = inlined_call_operand.vmem [shape: f32[128,1], index: 6, kind: output, shape index: {2}]  }
   0x1   :  { %v40_v0 = vld [vmem:[%s686_s1 + $0x18] sm:$0xff]  ;;  %v39_v1 = vld [vmem:[%s686_s1 + $0x10] sm:$0xff]  ;;  %v38_v2 = vld [vmem:[%s686_s1 + $0x8] sm:$0xff] }
   0x2   :  { %102 = vmatpush.msra.mxu0 %v40_v0  ;;  %350 = vmatpush.msra.mxu1 %v40_v0  ;;  %v37_v3 = vld [vmem:[%s686_s1] sm:$0xff] }
   0x3   :  { %352 = vmatpush.msra.mxu3 %v40_v0  ;;  %351 = vmatpush.msra.mxu2 %v40_v0  ;;  %v21_v4 = vld [vmem:[%s685_s0] sm:$0xff] }
   0x4   :  { %103 = vmatpush.msra.mxu0 %v39_v1  ;;  %353 = vmatpush.msra.mxu1 %v39_v1  ;;  %v25_v5 = vld [vmem:[%s685_s0 + $0x20] sm:$0xff] }
   0x5   :  { %355 = vmatpush.msra.mxu3 %v39_v1  ;;  %354 = vmatpush.msra.mxu2 %v39_v1  ;;  %v33_v6 = vld [vmem:[%s685_s0 + $0x60] sm:$0xff] }
   0x6   :  { %104 = vmatpush.msra.mxu0 %v38_v2  ;;  %356 = vmatpush.msra.mxu1 %v38_v2  ;;  %v29_v7 = vld [vmem:[%s685_s0 + $0x40] sm:$0xff] }
   0x7   :  { %358 = vmatpush.msra.mxu3 %v38_v2  ;;  %357 = vmatpush.msra.mxu2 %v38_v2 }
   0x8   :  { %105 = vmatpush.msra.mxu0 %v37_v3  ;;  %359 = vmatpush.msra.mxu1 %v37_v3 }
   0x9   :  { %12 = vsyncpa [#allocation3], 0  ;;  %334 = vmatmul.msk.f32.vlgmr.msra.gmra.mxu0 %vm41_vm0, %v21_v4  ;;  %338 = vmatmul.msk.f32.vlgmr.msra.gmra.mxu1 %vm41_vm0, %v25_v5  ;;  %v22_v8 = vld [vmem:[%s685_s0 + $0x8] sm:$0xff]  ;;  %v23_v12 = vld [vmem:[%s685_s0 + $0x10] sm:$0xff]  ;;  %s314_s16 = sshll.u32 %s689_s4, 4  ;;  %s394_s17 = smov 128   ;;  %s315_s16 = int_to_ptr.hbm [resolvable:$true] %s314_s16 }
   0xa   :  { %361 = vmatpush.msra.mxu3 %v37_v3  ;;  %360 = vmatpush.msra.mxu2 %v37_v3  ;;  %v26_v9 = vld [vmem:[%s685_s0 + $0x28] sm:$0xff]  ;;  %v27_v13 = vld [vmem:[%s685_s0 + $0x30] sm:$0xff]  ;;  %v24_v16 = vld [vmem:[%s685_s0 + $0x18] sm:$0xff]  ;;  %s395_s18 = smov 8   ;;  %vm207_vm1 = vcmask 7168  }
   0xb   :  { %346 = vmatmul.msk.f32.vlgmr.msra.gmra.mxu3 %vm41_vm0, %v33_v6  ;;  %342 = vmatmul.msk.f32.vlgmr.msra.gmra.mxu2 %vm41_vm0, %v29_v7  ;;  %v34_v10 = vld [vmem:[%s685_s0 + $0x68] sm:$0xff]  ;;  %v35_v14 = vld [vmem:[%s685_s0 + $0x70] sm:$0xff]  ;;  %v28_v17 = vld [vmem:[%s685_s0 + $0x38] sm:$0xff] }
   0xc   :  { %v30_v11 = vld [vmem:[%s685_s0 + $0x48] sm:$0xff]  ;;  %v31_v15 = vld [vmem:[%s685_s0 + $0x50] sm:$0xff]  ;;  %v32_v18 = vld [vmem:[%s685_s0 + $0x58] sm:$0xff] }
   0xd   :  { %v36_v19 = vld [vmem:[%s685_s0 + $0x78] sm:$0xff]  ;;  %v510_v20 = vld [vmem:[%s687_s2] ss:$0 sm:$0xff]  ;;  %s393_s0 = smov [#allocation2]  }
   0xe   :  { %v515_v21 = vld [vmem:[%s688_s3] ss:$0 sm:$0xff]  ;;  %s312_s2 = sshll.u32 %s393_s0, 4  ;;  %s313_s2 = int_to_ptr.vmem [resolvable:$true] %s312_s2 }
  0x11   :  { %335 = vmatmul.msk.f32.gmra.mxu0 %vm41_vm0, %v22_v8  ;;  %339 = vmatmul.msk.f32.gmra.mxu1 %vm41_vm0, %v26_v9 }
  0x13   :  { %347 = vmatmul.msk.f32.gmra.mxu3 %vm41_vm0, %v34_v10  ;;  %343 = vmatmul.msk.f32.gmra.mxu2 %vm41_vm0, %v30_v11 }
  0x19   :  { %336 = vmatmul.msk.f32.gmra.mxu0 %vm41_vm0, %v23_v12  ;;  %340 = vmatmul.msk.f32.gmra.mxu1 %vm41_vm0, %v27_v13 }
  0x1b   :  { %348 = vmatmul.msk.f32.gmra.mxu3 %vm41_vm0, %v35_v14  ;;  %344 = vmatmul.msk.f32.gmra.mxu2 %vm41_vm0, %v31_v15 }
  0x21   :  { %337 = vmatmul.msk.f32.gmra.mxu0 %vm41_vm0, %v24_v16  ;;  %341 = vmatmul.msk.f32.gmra.mxu1 %vm41_vm0, %v28_v17 }
  0x23   :  { %345 = vmatmul.msk.f32.gmra.mxu2 %vm41_vm0, %v32_v18  ;;  %349 = vmatmul.msk.f32.gmra.mxu3 %vm41_vm0, %v36_v19 }
  0x86   :  { %v107_v22 = vpop.f32.mrf.mxu0  ;;  %v119_v23 = vpop.f32.mrf.mxu1 }
  0x87   :  { %292 = vst [vmem:[#allocation2] sm:$0xff] %v107_v22  ;;  %v163_v24 = vmul.f32 %v510_v20, %v119_v23  ;;  %v228_v25 = vmul.f32 %v515_v21, %v107_v22  ;;  %v159_v26 = vmul.f32 %v510_v20, %v107_v22  ;;  %v232_v27 = vmul.f32 %v515_v21, %v119_v23 }
  0x88   :  { %296 = vst [vmem:[#allocation2 + $0x20] sm:$0xff] %v119_v23 }
  0x89   :  { %183 = vadd.xlane.f32.xlu2 %v163_v24  ;;  %244 = vadd.xlane.f32.xlu1 %v228_v25 }
  0x8a   :  { %175 = vadd.xlane.f32.xlu0 %v159_v26 }
  0x8e   :  { %v143_v28 = vpop.f32.mrf.mxu3  ;;  %v131_v29 = vpop.f32.mrf.mxu2 }
  0x8f   :  { %304 = vst [vmem:[#allocation2 + $0x60] sm:$0xff] %v143_v28  ;;  %v240_v30 = vmul.f32 %v515_v21, %v143_v28  ;;  %v171_v31 = vmul.f32 %v510_v20, %v143_v28  ;;  %v110_v32 = vpop.f32.mrf.mxu0  ;;  %v122_v33 = vpop.f32.mrf.mxu1  ;;  %v167_v34 = vmul.f32 %v510_v20, %v131_v29  ;;  %v236_v36 = vmul.f32 %v515_v21, %v131_v29 }
  0x90   :  { %300 = vst [vmem:[#allocation2 + $0x40] sm:$0xff] %v131_v29  ;;  %v164_v41 = vmul.f32 %v510_v20, %v122_v33  ;;  %v160_v43 = vmul.f32 %v510_v20, %v110_v32  ;;  %v233_v49 = vmul.f32 %v515_v21, %v122_v33  ;;  %v229_v52 = vmul.f32 %v515_v21, %v110_v32 }
  0x91   :  { %252 = vadd.xlane.f32.xlu2 %v232_v27  ;;  %268 = vadd.xlane.f32.xlu1 %v240_v30  ;;  %293 = vst [vmem:[#allocation2 + $0x8] sm:$0xff] %v110_v32 }
  0x92   :  { %199 = vadd.xlane.f32.xlu0 %v171_v31  ;;  %297 = vst [vmem:[#allocation2 + $0x28] sm:$0xff] %v122_v33 }
  0x96   :  { %v524_v35 = vpop.f32.mrf.mxu3  ;;  %v134_v37 = vpop.f32.mrf.mxu2 }
  0x97   :  { %305 = vst [vmem:[#allocation2 + $0x68] sm:$0xff] %v524_v35  ;;  %v172_v38 = vmul.f32 %v510_v20, %v524_v35  ;;  %v113_v39 = vpop.f32.mrf.mxu0  ;;  %v125_v40 = vpop.f32.mrf.mxu1  ;;  %v237_v42 = vmul.f32 %v515_v21, %v134_v37  ;;  %v168_v55 = vmul.f32 %v510_v20, %v134_v37  ;;  %v241_v2 = vmul.f32 %v515_v21, %v524_v35 }
  0x98   :  { %301 = vst [vmem:[#allocation2 + $0x48] sm:$0xff] %v134_v37  ;;  %v161_v48 = vmul.f32 %v510_v20, %v113_v39  ;;  %v234_v54 = vmul.f32 %v515_v21, %v125_v40  ;;  %v165_v58 = vmul.f32 %v510_v20, %v125_v40  ;;  %v230_v61 = vmul.f32 %v515_v21, %v113_v39 }
  0x99   :  { %191 = vadd.xlane.f32.xlu2 %v167_v34  ;;  %201 = vadd.xlane.f32.xlu1 %v172_v38  ;;  %294 = vst [vmem:[#allocation2 + $0x10] sm:$0xff] %v113_v39 }
  0x9a   :  { %260 = vadd.xlane.f32.xlu0 %v236_v36  ;;  %298 = vst [vmem:[#allocation2 + $0x30] sm:$0xff] %v125_v40 }
  0x9e   :  { %v149_v44 = vpop.f32.mrf.mxu3  ;;  %v137_v45 = vpop.f32.mrf.mxu2 }
  0x9f   :  { %306 = vst [vmem:[#allocation2 + $0x70] sm:$0xff] %v149_v44  ;;  %v116_v46 = vpop.f32.mrf.mxu0  ;;  %v128_v47 = vpop.f32.mrf.mxu1  ;;  %v173_v53 = vmul.f32 %v510_v20, %v149_v44  ;;  %v238_v56 = vmul.f32 %v515_v21, %v137_v45  ;;  %v169_v57 = vmul.f32 %v510_v20, %v137_v45  ;;  %v242_v5 = vmul.f32 %v515_v21, %v149_v44 }
  0xa0   :  { %302 = vst [vmem:[#allocation2 + $0x50] sm:$0xff] %v137_v45  ;;  %v235_v59 = vmul.f32 %v515_v21, %v128_v47  ;;  %v162_v60 = vmul.f32 %v510_v20, %v116_v46  ;;  %v166_v63 = vmul.f32 %v510_v20, %v128_v47  ;;  %v231_v3 = vmul.f32 %v515_v21, %v116_v46 }
  0xa1   :  { %185 = vadd.xlane.f32.xlu2 %v164_v41  ;;  %262 = vadd.xlane.f32.xlu1 %v237_v42  ;;  %295 = vst [vmem:[#allocation2 + $0x18] sm:$0xff] %v116_v46 }
  0xa2   :  { %177 = vadd.xlane.f32.xlu0 %v160_v43  ;;  %299 = vst [vmem:[#allocation2 + $0x38] sm:$0xff] %v128_v47 }
  0xa6   :  { %v140_v50 = vpop.f32.mrf.mxu2  ;;  %v152_v51 = vpop.f32.mrf.mxu3 }
  0xa7   :  { %303 = vst [vmem:[#allocation2 + $0x58] sm:$0xff] %v140_v50  ;;  %v170_v62 = vmul.f32 %v510_v20, %v140_v50  ;;  %v174_v0 = vmul.f32 %v510_v20, %v152_v51  ;;  %v239_v1 = vmul.f32 %v515_v21, %v140_v50  ;;  %v243_v4 = vmul.f32 %v515_v21, %v152_v51 }
  0xa8   :  { %307 = vst [vmem:[#allocation2 + $0x78] sm:$0xff] %v152_v51 }
  0xa9   :  { %246 = vadd.xlane.f32.xlu2 %v229_v52  ;;  %179 = vadd.xlane.f32.xlu1 %v161_v48  ;;  %320 = dma.vmem_to_hbm [thread:$0]  %s313_s2, 2048, %s315_s16, [#allocation3], %s394_s17, %s394_s17, %s395_s18  }
  0xaa   :  { %254 = vadd.xlane.f32.xlu0 %v233_v49 }
  0xb1   :  { %203 = vadd.xlane.f32.xlu2 %v173_v53  ;;  %256 = vadd.xlane.f32.xlu1 %v234_v54 }
  0xb2   :  { %193 = vadd.xlane.f32.xlu0 %v168_v55 }
  0xb9   :  { %264 = vadd.xlane.f32.xlu2 %v238_v56  ;;  %195 = vadd.xlane.f32.xlu1 %v169_v57 }
  0xba   :  { %187 = vadd.xlane.f32.xlu0 %v165_v58 }
  0xc1   :  { %258 = vadd.xlane.f32.xlu2 %v235_v59  ;;  %181 = vadd.xlane.f32.xlu1 %v162_v60 }
  0xc2   :  { %248 = vadd.xlane.f32.xlu0 %v230_v61 }
  0xc9   :  { %197 = vadd.xlane.f32.xlu2 %v170_v62  ;;  %189 = vadd.xlane.f32.xlu1 %v166_v63 }
  0xca   :  { %205 = vadd.xlane.f32.xlu0 %v174_v0 }
  0xd1   :  { %270 = vadd.xlane.f32.xlu2 %v241_v2  ;;  %250 = vadd.xlane.f32.xlu1 %v231_v3 }
  0xd2   :  { %266 = vadd.xlane.f32.xlu0 %v239_v1 }
  0xd9   :  { %274 = vadd.xlane.f32.xlu1 %v243_v4 }
  0xda   :  { %272 = vadd.xlane.f32.xlu0 %v242_v5 }
  0xfc   :  { %v184_v6 = vpop.xlane.xlu2 %183  ;;  %v245_v7 = vpop.xlane.xlu1 %244 }
  0xfd   :  { %212 = vst.msk [vmem:[%s690_s5 + $0x20] sm:$0xff] %vm207_vm1, %v184_v6  ;;  %v176_v8 = vpop.xlane.xlu0 %175 }
  0xfe   :  { %276 = vst.msk [vmem:[%s691_s6] sm:$0xff] %vm207_vm1, %v245_v7 }
  0xff   :  { %208 = vst.msk [vmem:[%s690_s5] sm:$0xff] %vm207_vm1, %v176_v8 }
 0x104   :  { %v253_v9 = vpop.xlane.xlu2 %252  ;;  %v269_v10 = vpop.xlane.xlu1 %268 }
 0x105   :  { %280 = vst.msk [vmem:[%s691_s6 + $0x20] sm:$0xff] %vm207_vm1, %v253_v9  ;;  %v200_v11 = vpop.xlane.xlu0 %199 }
 0x106   :  { %288 = vst.msk [vmem:[%s691_s6 + $0x60] sm:$0xff] %vm207_vm1, %v269_v10 }
 0x107   :  { %220 = vst.msk [vmem:[%s690_s5 + $0x60] sm:$0xff] %vm207_vm1, %v200_v11 }
 0x10c   :  { %v192_v12 = vpop.xlane.xlu2 %191  ;;  %v202_v13 = vpop.xlane.xlu1 %201 }
 0x10d   :  { %216 = vst.msk [vmem:[%s690_s5 + $0x40] sm:$0xff] %vm207_vm1, %v192_v12  ;;  %v261_v14 = vpop.xlane.xlu0 %260 }
 0x10e   :  { %221 = vst.msk [vmem:[%s690_s5 + $0x68] sm:$0xff] %vm207_vm1, %v202_v13 }
 0x10f   :  { %284 = vst.msk [vmem:[%s691_s6 + $0x40] sm:$0xff] %vm207_vm1, %v261_v14 }
 0x114   :  { %v186_v15 = vpop.xlane.xlu2 %185  ;;  %v263_v16 = vpop.xlane.xlu1 %262 }
 0x115   :  { %213 = vst.msk [vmem:[%s690_s5 + $0x28] sm:$0xff] %vm207_vm1, %v186_v15  ;;  %v178_v17 = vpop.xlane.xlu0 %177 }
 0x116   :  { %285 = vst.msk [vmem:[%s691_s6 + $0x48] sm:$0xff] %vm207_vm1, %v263_v16 }
 0x117   :  { %209 = vst.msk [vmem:[%s690_s5 + $0x8] sm:$0xff] %vm207_vm1, %v178_v17 }
 0x11c   :  { %v247_v18 = vpop.xlane.xlu2 %246  ;;  %v180_v19 = vpop.xlane.xlu1 %179 }
 0x11d   :  { %277 = vst.msk [vmem:[%s691_s6 + $0x8] sm:$0xff] %vm207_vm1, %v247_v18  ;;  %v255_v20 = vpop.xlane.xlu0 %254 }
 0x11e   :  { %281 = vst.msk [vmem:[%s691_s6 + $0x28] sm:$0xff] %vm207_vm1, %v255_v20 }
 0x11f   :  { %210 = vst.msk [vmem:[%s690_s5 + $0x10] sm:$0xff] %vm207_vm1, %v180_v19 }
 0x124   :  { %v204_v21 = vpop.xlane.xlu2 %203  ;;  %v257_v22 = vpop.xlane.xlu1 %256 }
 0x125   :  { %222 = vst.msk [vmem:[%s690_s5 + $0x70] sm:$0xff] %vm207_vm1, %v204_v21  ;;  %v194_v23 = vpop.xlane.xlu0 %193 }
 0x126   :  { %217 = vst.msk [vmem:[%s690_s5 + $0x48] sm:$0xff] %vm207_vm1, %v194_v23 }
 0x127   :  { %282 = vst.msk [vmem:[%s691_s6 + $0x30] sm:$0xff] %vm207_vm1, %v257_v22 }
 0x12c   :  { %v265_v24 = vpop.xlane.xlu2 %264  ;;  %v196_v25 = vpop.xlane.xlu1 %195 }
 0x12d   :  { %286 = vst.msk [vmem:[%s691_s6 + $0x50] sm:$0xff] %vm207_vm1, %v265_v24  ;;  %v188_v26 = vpop.xlane.xlu0 %187 }
 0x12e   :  { %214 = vst.msk [vmem:[%s690_s5 + $0x30] sm:$0xff] %vm207_vm1, %v188_v26 }
 0x12f   :  { %218 = vst.msk [vmem:[%s690_s5 + $0x50] sm:$0xff] %vm207_vm1, %v196_v25 }
 0x134   :  { %v259_v27 = vpop.xlane.xlu2 %258  ;;  %v182_v28 = vpop.xlane.xlu1 %181 }
 0x135   :  { %283 = vst.msk [vmem:[%s691_s6 + $0x38] sm:$0xff] %vm207_vm1, %v259_v27  ;;  %v249_v29 = vpop.xlane.xlu0 %248 }
 0x136   :  { %278 = vst.msk [vmem:[%s691_s6 + $0x10] sm:$0xff] %vm207_vm1, %v249_v29 }
 0x137   :  { %211 = vst.msk [vmem:[%s690_s5 + $0x18] sm:$0xff] %vm207_vm1, %v182_v28 }
 0x13c   :  { %v198_v30 = vpop.xlane.xlu2 %197  ;;  %v190_v31 = vpop.xlane.xlu1 %189 }
 0x13d   :  { %219 = vst.msk [vmem:[%s690_s5 + $0x58] sm:$0xff] %vm207_vm1, %v198_v30  ;;  %v206_v32 = vpop.xlane.xlu0 %205 }
 0x13e   :  { %223 = vst.msk [vmem:[%s690_s5 + $0x78] sm:$0xff] %vm207_vm1, %v206_v32 }
 0x13f   :  { %215 = vst.msk [vmem:[%s690_s5 + $0x38] sm:$0xff] %vm207_vm1, %v190_v31 }
 0x144   :  { %v271_v33 = vpop.xlane.xlu2 %270  ;;  %v251_v34 = vpop.xlane.xlu1 %250 }
 0x145   :  { %289 = vst.msk [vmem:[%s691_s6 + $0x68] sm:$0xff] %vm207_vm1, %v271_v33  ;;  %v267_v35 = vpop.xlane.xlu0 %266 }
 0x146   :  { %287 = vst.msk [vmem:[%s691_s6 + $0x58] sm:$0xff] %vm207_vm1, %v267_v35 }
 0x147   :  { %279 = vst.msk [vmem:[%s691_s6 + $0x18] sm:$0xff] %vm207_vm1, %v251_v34 }
 0x14c   :  { %v275_v36 = vpop.xlane.xlu1 %274 }
 0x14d   :  { %v273_v37 = vpop.xlane.xlu0 %272  ;;  %291 = vst.msk [vmem:[%s691_s6 + $0x78] sm:$0xff] %vm207_vm1, %v275_v36 }
 0x14e   :  { %290 = vst.msk [vmem:[%s691_s6 + $0x70] sm:$0xff] %vm207_vm1, %v273_v37 }
 0x14f   :  { %391 = dma.done.wait [#allocation3], 2048  }
 0x150   :  { %392 = vsyncadd [#allocation3], 4294965248 }
 0x151   :  { %333 = vsyncpa [#allocation3], 1 }

</bundles_post_ra>
